<compile_context>
chip_gen: v5e
topology: v5e:2x2
jax: 0.10.0
libtpu: 0.0.40
codegen_flags: <defaults>
</compile_context>

<pallas_src>
import jax
import jax.numpy as jnp
from jax.experimental import pallas as pl
from jax.experimental.pallas import tpu as pltpu

EPS = 1e-5


# ---------------- wrapper-side constant-folded operators (tiny, XLA) ---------

def _banded_conv_weights(w_oihw, W):
    """PyTorch (O,I,3,3) conv weight -> banded matrices (3, W*I, W*O).

    B[kh, u*I + ci, w*O + co] = w[co, ci, kh, kw]  where u == w + kw - 1,
    i.e. the kw taps and the padding=1 zero padding along W are folded into the
    band structure (out-of-range taps are simply not present).
    """
    CO, CI, KH, KW = w_oihw.shape
    u = jnp.arange(W)
    w = jnp.arange(W)
    kw = jnp.arange(KW)
    # E[k, u, w] = 1  iff  u == w + k - 1
    E = (u[None, :, None] == (w[None, None, :] + kw[:, None, None] - 1))
    E = E.astype(jnp.float32)
    B = jnp.einsum("oihk,kuw->huiwo", w_oihw.astype(jnp.float32), E)
    return B.reshape(KH, W * CI, W * CO)


def _row_shift_matrices(N, H):
    """S[kh, r_out, r_in] = 1 iff row r_in is (same n, h_out + kh - 1) and valid.

    Carries the kh tap offset and the zero padding along H (invalid rows -> all
    zero), so the kernel never pads or slices along H.
    """
    ro = jnp.arange(N * H)[:, None]
    ri = jnp.arange(N * H)[None, :]
    same_n = (ro // H) == (ri // H)
    mats = [(same_n & ((ri % H) == (ro % H + kh - 1))).astype(jnp.float32)
            for kh in range(3)]
    return jnp.stack(mats, axis=0)                      # (3, N*H, N*H)


# ---------------- fused FirstBlock kernel ------------------------------------

def first_block(x_nchw, params):
    """FirstBlock.forward: NCHW in, NCHW out (matches the PyTorch module)."""
    N, CI, H, W = x_nchw.shape
    CO = params["w1"].shape[0]
    NH, WCI, WCO = N * H, W * CI, W * CO
    inv_cnt = 1.0 / float(N * H * W)                    # BN count (biased var)

    # Glue: NCHW -> (N*H, W*Cin) rows; constant-folded conv / BN operators.
    x2d = jnp.transpose(x_nchw, (0, 2, 3, 1)).reshape(NH, WCI).astype(jnp.float32)
    s_mats = _row_shift_matrices(N, H)                  # (3, NH, NH)
    b1 = _banded_conv_weights(params["w1"], W)          # (3, W*CI, W*CO)
    b2 = _banded_conv_weights(params["w2"], W)          # (3, W*CO, W*CO)

    def as_cols(v):                                     # (CO,) -> (1, W*CO), col (w,c) -> v[c]
        return jnp.tile(v.astype(jnp.float32), W).reshape(1, WCO)

    c_ids = jnp.tile(jnp.arange(CO), W)
    # P[(w,c), (w',c')] = [c == c'] : per-channel fold over w + broadcast back.
    fold_bcast = (c_ids[:, None] == c_ids[None, :]).astype(jnp.float32)   # (WCO, WCO)

    def kernel(x_ref, s_ref, b1_ref, b2_ref, g1_ref, be1_ref, g2_ref, be2_ref,
               p_ref, o_ref):
        p = p_ref[...]

        def conv_bn_relu(a, b_ref, gamma_cols, beta_cols):
            # a: (N*H, W*Cin).  3x3 conv (pad=1) = sum_kh  S[kh] @ a @ B[kh].
            acc = jnp.zeros((NH, WCO), jnp.float32)
            for kh in range(3):                          # static unroll, MXU only
                shifted = jnp.dot(s_ref[kh], a, preferred_element_type=jnp.float32)
                acc = acc + jnp.dot(shifted, b_ref[kh],
                                    preferred_element_type=jnp.float32)
            # conv bias omitted: exactly cancelled by the batch-stats BN below.

            # BatchNorm2d (training-mode batch stats) in a single pass:
            # per-channel sums via fold matmul with the constant 0/1 matrix p.
            s = jnp.sum(jnp.dot(acc, p, preferred_element_type=jnp.float32),
                        axis=0, keepdims=True)           # (1, W*Cout)
            ss = jnp.sum(jnp.dot(acc * acc, p, preferred_element_type=jnp.float32),
                         axis=0, keepdims=True)
            mean = s * inv_cnt
            var = jnp.maximum(ss * inv_cnt - mean * mean, 0.0)
            scale = gamma_cols * jax.lax.rsqrt(var + EPS)
            shift = beta_cols - mean * scale
            return jnp.maximum(acc * scale + shift, 0.0)  # fused BN affine + ReLU

        a1 = conv_bn_relu(x_ref[...], b1_ref, g1_ref[...], be1_ref[...])
        a2 = conv_bn_relu(a1, b2_ref, g2_ref[...], be2_ref[...])
        o_ref[...] = a2                                   # lane-dense (N*H, W*Cout) store

    out = pl.pallas_call(
        kernel,
        out_shape=jax.ShapeDtypeStruct((NH, WCO), jnp.float32),
        in_specs=[pl.BlockSpec(memory_space=pltpu.MemorySpace.VMEM)] * 9,
        out_specs=pl.BlockSpec(memory_space=pltpu.MemorySpace.VMEM),
    )(x2d, s_mats, b1, b2,
      as_cols(params["g1"]), as_cols(params["be1"]),
      as_cols(params["g2"]), as_cols(params["be2"]),
      fold_bcast)

    out = out.reshape(N, H, W, CO)                        # rows=(n,h), cols=(w,c)
    return jnp.transpose(out, (0, 3, 1, 2))               # NHWC -> NCHW


# ---------------- deterministic parameter init (PyTorch-shaped) --------------

def init_params(key, in_ch, out_ch):
    def conv_init(k, cin, cout):
        kw, kb = jax.random.split(k)
        bound = 1.0 / jnp.sqrt(jnp.float32(cin * 9))
        w = jax.random.uniform(kw, (cout, cin, 3, 3), jnp.float32, -bound, bound)
        b = jax.random.uniform(kb, (cout,), jnp.float32, -bound, bound)
        return w, b

    k1, k2 = jax.random.split(key)
    w1, b1 = conv_init(k1, in_ch, out_ch)
    w2, b2 = conv_init(k2, out_ch, out_ch)
    # BatchNorm2d default init: weight (gamma) = 1, bias (beta) = 0
    return dict(
        w1=w1, b1=b1, g1=jnp.ones((out_ch,), jnp.float32), be1=jnp.zeros((out_ch,), jnp.float32),
        w2=w2, b2=b2, g2=jnp.ones((out_ch,), jnp.float32), be2=jnp.zeros((out_ch,), jnp.float32),
    )


# ---------------- pure-JAX reference (keeps the conv bias) -------------------

def _ref_conv_bn_relu(x_nchw, w_oihw, b, gamma, beta):
    y = jax.lax.conv_general_dilated(
        x_nchw, w_oihw, window_strides=(1, 1), padding=((1, 1), (1, 1)),
        dimension_numbers=("NCHW", "OIHW", "NCHW"), precision="highest")
    y = y + b[None, :, None, None]
    mean = y.mean(axis=(0, 2, 3), keepdims=True)
    var = ((y - mean) ** 2).mean(axis=(0, 2, 3), keepdims=True)
    y = (y - mean) / jnp.sqrt(var + EPS)
    y = y * gamma[None, :, None, None] + beta[None, :, None, None]
    return jnp.maximum(y, 0.0)


def first_block_ref(x_nchw, p):
    x = _ref_conv_bn_relu(x_nchw, p["w1"], p["b1"], p["g1"], p["be1"])
    x = _ref_conv_bn_relu(x, p["w2"], p["b2"], p["g2"], p["be2"])
    return x


if __name__ == "__main__":
    key = jax.random.PRNGKey(0)
    k_x, k_p = jax.random.split(key)

    N, IN_CH, OUT_CH, H, W = 2, 4, 16, 16, 16  # placeholder, fixed just below
    N, IN_CH, OUT_CH, H, W = 2, 4, 8, 16, 16
    x = jax.random.normal(k_x, (N, IN_CH, H, W), jnp.float32)
    params = init_params(k_p, IN_CH, OUT_CH)

    out = jax.jit(first_block)(x, params)
    out = jax.block_until_ready(out)

    assert out.shape == (N, OUT_CH, H, W), out.shape
    assert out.dtype == jnp.float32

    ref = jax.block_until_ready(jax.jit(first_block_ref)(x, params))
    max_err = float(jnp.max(jnp.abs(out - ref)))
    assert jnp.all(jnp.isfinite(out)), "non-finite output"
    assert max_err < 1e-2, f"mismatch vs reference: max abs err {max_err}"

    print("KERNEL_OK")
</pallas_src>

<mosaic_0001>
module attributes {stable_mosaic.version = 11 : i64} {
  func.func @kernel(%arg0: memref<32x64xf32, #tpu.memory_space<vmem>>, %arg1: memref<3x32x32xf32, #tpu.memory_space<vmem>>, %arg2: memref<3x64x128xf32, #tpu.memory_space<vmem>>, %arg3: memref<3x128x128xf32, #tpu.memory_space<vmem>>, %arg4: memref<1x128xf32, #tpu.memory_space<vmem>>, %arg5: memref<1x128xf32, #tpu.memory_space<vmem>>, %arg6: memref<1x128xf32, #tpu.memory_space<vmem>>, %arg7: memref<1x128xf32, #tpu.memory_space<vmem>>, %arg8: memref<128x128xf32, #tpu.memory_space<vmem>>, %arg9: memref<32x128xf32, #tpu.memory_space<vmem>>) attributes {dimension_semantics = [], scalar_prefetch = 0 : i64, scratch_operands = 0 : i64, tpu.core_type = #tpu.core_type<tc>} {
    %c0 = arith.constant 0 : index
    %c0_0 = arith.constant 0 : index
    %0 = vector.load %arg8[%c0, %c0_0] : memref<128x128xf32, #tpu.memory_space<vmem>>, vector<128x128xf32>
    %c0_1 = arith.constant 0 : index
    %c0_2 = arith.constant 0 : index
    %1 = vector.load %arg0[%c0_1, %c0_2] : memref<32x64xf32, #tpu.memory_space<vmem>>, vector<32x64xf32>
    %c0_3 = arith.constant 0 : index
    %c0_4 = arith.constant 0 : index
    %2 = vector.load %arg4[%c0_3, %c0_4] : memref<1x128xf32, #tpu.memory_space<vmem>>, vector<1x128xf32>
    %c0_5 = arith.constant 0 : index
    %c0_6 = arith.constant 0 : index
    %3 = vector.load %arg5[%c0_5, %c0_6] : memref<1x128xf32, #tpu.memory_space<vmem>>, vector<1x128xf32>
    %cst = arith.constant 0.000000e+00 : f32
    %4 = vector.broadcast %cst : f32 to vector<32x128xf32>
    %c0_7 = arith.constant 0 : index
    %c0_8 = arith.constant 0 : index
    %c0_9 = arith.constant 0 : index
    %5 = vector.load %arg1[%c0_7, %c0_8, %c0_9] : memref<3x32x32xf32, #tpu.memory_space<vmem>>, vector<1x32x32xf32>
    %6 = vector.shape_cast %5 : vector<1x32x32xf32> to vector<32x32xf32>
    %cst_10 = arith.constant dense<0.000000e+00> : vector<32x64xf32>
    %7 = tpu.matmul %6, %1, %cst_10 {dimension_numbers = #tpu.dot_dimension_numbers<[1], [0], [0], [1], [0, 0, 1, 1], [], []>} : vector<32x32xf32>, vector<32x64xf32>, vector<32x64xf32> -> vector<32x64xf32>
    %c0_11 = arith.constant 0 : index
    %c0_12 = arith.constant 0 : index
    %c0_13 = arith.constant 0 : index
    %8 = vector.load %arg2[%c0_11, %c0_12, %c0_13] : memref<3x64x128xf32, #tpu.memory_space<vmem>>, vector<1x64x128xf32>
    %9 = vector.shape_cast %8 : vector<1x64x128xf32> to vector<64x128xf32>
    %cst_14 = arith.constant dense<0.000000e+00> : vector<32x128xf32>
    %10 = tpu.matmul %7, %9, %cst_14 {dimension_numbers = #tpu.dot_dimension_numbers<[1], [0], [0], [1], [0, 0, 1, 1], [], []>} : vector<32x64xf32>, vector<64x128xf32>, vector<32x128xf32> -> vector<32x128xf32>
    %11 = arith.addf %4, %10 : vector<32x128xf32>
    %c1 = arith.constant 1 : index
    %c0_15 = arith.constant 0 : index
    %c0_16 = arith.constant 0 : index
    %12 = vector.load %arg1[%c1, %c0_15, %c0_16] : memref<3x32x32xf32, #tpu.memory_space<vmem>>, vector<1x32x32xf32>
    %13 = vector.shape_cast %12 : vector<1x32x32xf32> to vector<32x32xf32>
    %cst_17 = arith.constant dense<0.000000e+00> : vector<32x64xf32>
    %14 = tpu.matmul %13, %1, %cst_17 {dimension_numbers = #tpu.dot_dimension_numbers<[1], [0], [0], [1], [0, 0, 1, 1], [], []>} : vector<32x32xf32>, vector<32x64xf32>, vector<32x64xf32> -> vector<32x64xf32>
    %c1_18 = arith.constant 1 : index
    %c0_19 = arith.constant 0 : index
    %c0_20 = arith.constant 0 : index
    %15 = vector.load %arg2[%c1_18, %c0_19, %c0_20] : memref<3x64x128xf32, #tpu.memory_space<vmem>>, vector<1x64x128xf32>
    %16 = vector.shape_cast %15 : vector<1x64x128xf32> to vector<64x128xf32>
    %cst_21 = arith.constant dense<0.000000e+00> : vector<32x128xf32>
    %17 = tpu.matmul %14, %16, %cst_21 {dimension_numbers = #tpu.dot_dimension_numbers<[1], [0], [0], [1], [0, 0, 1, 1], [], []>} : vector<32x64xf32>, vector<64x128xf32>, vector<32x128xf32> -> vector<32x128xf32>
    %18 = arith.addf %11, %17 : vector<32x128xf32>
    %c2 = arith.constant 2 : index
    %c0_22 = arith.constant 0 : index
    %c0_23 = arith.constant 0 : index
    %19 = vector.load %arg1[%c2, %c0_22, %c0_23] : memref<3x32x32xf32, #tpu.memory_space<vmem>>, vector<1x32x32xf32>
    %20 = vector.shape_cast %19 : vector<1x32x32xf32> to vector<32x32xf32>
    %cst_24 = arith.constant dense<0.000000e+00> : vector<32x64xf32>
    %21 = tpu.matmul %20, %1, %cst_24 {dimension_numbers = #tpu.dot_dimension_numbers<[1], [0], [0], [1], [0, 0, 1, 1], [], []>} : vector<32x32xf32>, vector<32x64xf32>, vector<32x64xf32> -> vector<32x64xf32>
    %c2_25 = arith.constant 2 : index
    %c0_26 = arith.constant 0 : index
    %c0_27 = arith.constant 0 : index
    %22 = vector.load %arg2[%c2_25, %c0_26, %c0_27] : memref<3x64x128xf32, #tpu.memory_space<vmem>>, vector<1x64x128xf32>
    %23 = vector.shape_cast %22 : vector<1x64x128xf32> to vector<64x128xf32>
    %cst_28 = arith.constant dense<0.000000e+00> : vector<32x128xf32>
    %24 = tpu.matmul %21, %23, %cst_28 {dimension_numbers = #tpu.dot_dimension_numbers<[1], [0], [0], [1], [0, 0, 1, 1], [], []>} : vector<32x64xf32>, vector<64x128xf32>, vector<32x128xf32> -> vector<32x128xf32>
    %25 = arith.addf %18, %24 : vector<32x128xf32>
    %cst_29 = arith.constant dense<0.000000e+00> : vector<32x128xf32>
    %26 = tpu.matmul %25, %0, %cst_29 {dimension_numbers = #tpu.dot_dimension_numbers<[1], [0], [0], [1], [0, 0, 1, 1], [], []>} : vector<32x128xf32>, vector<128x128xf32>, vector<32x128xf32> -> vector<32x128xf32>
    %cst_30 = arith.constant dense<0.000000e+00> : vector<128xf32>
    %27 = vector.multi_reduction <add>, %26, %cst_30 [0] : vector<32x128xf32> to vector<128xf32>
    %28 = vector.shape_cast %27 : vector<128xf32> to vector<1x128xf32>
    %29 = arith.mulf %25, %25 : vector<32x128xf32>
    %cst_31 = arith.constant dense<0.000000e+00> : vector<32x128xf32>
    %30 = tpu.matmul %29, %0, %cst_31 {dimension_numbers = #tpu.dot_dimension_numbers<[1], [0], [0], [1], [0, 0, 1, 1], [], []>} : vector<32x128xf32>, vector<128x128xf32>, vector<32x128xf32> -> vector<32x128xf32>
    %cst_32 = arith.constant dense<0.000000e+00> : vector<128xf32>
    %31 = vector.multi_reduction <add>, %30, %cst_32 [0] : vector<32x128xf32> to vector<128xf32>
    %32 = vector.shape_cast %31 : vector<128xf32> to vector<1x128xf32>
    %cst_33 = arith.constant 0.001953125 : f32
    %33 = vector.broadcast %cst_33 : f32 to vector<1x128xf32>
    %34 = arith.mulf %28, %33 : vector<1x128xf32>
    %cst_34 = arith.constant 0.001953125 : f32
    %35 = vector.broadcast %cst_34 : f32 to vector<1x128xf32>
    %36 = arith.mulf %32, %35 : vector<1x128xf32>
    %37 = arith.mulf %34, %34 : vector<1x128xf32>
    %38 = arith.subf %36, %37 : vector<1x128xf32>
    %cst_35 = arith.constant 0.000000e+00 : f32
    %39 = vector.broadcast %cst_35 : f32 to vector<1x128xf32>
    %40 = arith.maximumf %38, %39 : vector<1x128xf32>
    %cst_36 = arith.constant 9.99999974E-6 : f32
    %41 = vector.broadcast %cst_36 : f32 to vector<1x128xf32>
    %42 = arith.addf %40, %41 : vector<1x128xf32>
    %43 = math.rsqrt %42 : vector<1x128xf32>
    %44 = arith.mulf %2, %43 : vector<1x128xf32>
    %45 = arith.mulf %34, %44 : vector<1x128xf32>
    %46 = arith.subf %3, %45 : vector<1x128xf32>
    %47 = vector.broadcast %44 : vector<1x128xf32> to vector<32x128xf32>
    %48 = arith.mulf %25, %47 : vector<32x128xf32>
    %49 = vector.broadcast %46 : vector<1x128xf32> to vector<32x128xf32>
    %50 = arith.addf %48, %49 : vector<32x128xf32>
    %cst_37 = arith.constant 0.000000e+00 : f32
    %51 = vector.broadcast %cst_37 : f32 to vector<32x128xf32>
    %52 = arith.maximumf %50, %51 : vector<32x128xf32>
    %c0_38 = arith.constant 0 : index
    %c0_39 = arith.constant 0 : index
    %53 = vector.load %arg6[%c0_38, %c0_39] : memref<1x128xf32, #tpu.memory_space<vmem>>, vector<1x128xf32>
    %c0_40 = arith.constant 0 : index
    %c0_41 = arith.constant 0 : index
    %54 = vector.load %arg7[%c0_40, %c0_41] : memref<1x128xf32, #tpu.memory_space<vmem>>, vector<1x128xf32>
    %cst_42 = arith.constant 0.000000e+00 : f32
    %55 = vector.broadcast %cst_42 : f32 to vector<32x128xf32>
    %c0_43 = arith.constant 0 : index
    %c0_44 = arith.constant 0 : index
    %c0_45 = arith.constant 0 : index
    %56 = vector.load %arg1[%c0_43, %c0_44, %c0_45] : memref<3x32x32xf32, #tpu.memory_space<vmem>>, vector<1x32x32xf32>
    %57 = vector.shape_cast %56 : vector<1x32x32xf32> to vector<32x32xf32>
    %cst_46 = arith.constant dense<0.000000e+00> : vector<32x128xf32>
    %58 = tpu.matmul %57, %52, %cst_46 {dimension_numbers = #tpu.dot_dimension_numbers<[1], [0], [0], [1], [0, 0, 1, 1], [], []>} : vector<32x32xf32>, vector<32x128xf32>, vector<32x128xf32> -> vector<32x128xf32>
    %c0_47 = arith.constant 0 : index
    %c0_48 = arith.constant 0 : index
    %c0_49 = arith.constant 0 : index
    %59 = vector.load %arg3[%c0_47, %c0_48, %c0_49] : memref<3x128x128xf32, #tpu.memory_space<vmem>>, vector<1x128x128xf32>
    %60 = vector.shape_cast %59 : vector<1x128x128xf32> to vector<128x128xf32>
    %cst_50 = arith.constant dense<0.000000e+00> : vector<32x128xf32>
    %61 = tpu.matmul %58, %60, %cst_50 {dimension_numbers = #tpu.dot_dimension_numbers<[1], [0], [0], [1], [0, 0, 1, 1], [], []>} : vector<32x128xf32>, vector<128x128xf32>, vector<32x128xf32> -> vector<32x128xf32>
    %62 = arith.addf %55, %61 : vector<32x128xf32>
    %c1_51 = arith.constant 1 : index
    %c0_52 = arith.constant 0 : index
    %c0_53 = arith.constant 0 : index
    %63 = vector.load %arg1[%c1_51, %c0_52, %c0_53] : memref<3x32x32xf32, #tpu.memory_space<vmem>>, vector<1x32x32xf32>
    %64 = vector.shape_cast %63 : vector<1x32x32xf32> to vector<32x32xf32>
    %cst_54 = arith.constant dense<0.000000e+00> : vector<32x128xf32>
    %65 = tpu.matmul %64, %52, %cst_54 {dimension_numbers = #tpu.dot_dimension_numbers<[1], [0], [0], [1], [0, 0, 1, 1], [], []>} : vector<32x32xf32>, vector<32x128xf32>, vector<32x128xf32> -> vector<32x128xf32>
    %c1_55 = arith.constant 1 : index
    %c0_56 = arith.constant 0 : index
    %c0_57 = arith.constant 0 : index
    %66 = vector.load %arg3[%c1_55, %c0_56, %c0_57] : memref<3x128x128xf32, #tpu.memory_space<vmem>>, vector<1x128x128xf32>
    %67 = vector.shape_cast %66 : vector<1x128x128xf32> to vector<128x128xf32>
    %cst_58 = arith.constant dense<0.000000e+00> : vector<32x128xf32>
    %68 = tpu.matmul %65, %67, %cst_58 {dimension_numbers = #tpu.dot_dimension_numbers<[1], [0], [0], [1], [0, 0, 1, 1], [], []>} : vector<32x128xf32>, vector<128x128xf32>, vector<32x128xf32> -> vector<32x128xf32>
    %69 = arith.addf %62, %68 : vector<32x128xf32>
    %c2_59 = arith.constant 2 : index
    %c0_60 = arith.constant 0 : index
    %c0_61 = arith.constant 0 : index
    %70 = vector.load %arg1[%c2_59, %c0_60, %c0_61] : memref<3x32x32xf32, #tpu.memory_space<vmem>>, vector<1x32x32xf32>
    %71 = vector.shape_cast %70 : vector<1x32x32xf32> to vector<32x32xf32>
    %cst_62 = arith.constant dense<0.000000e+00> : vector<32x128xf32>
    %72 = tpu.matmul %71, %52, %cst_62 {dimension_numbers = #tpu.dot_dimension_numbers<[1], [0], [0], [1], [0, 0, 1, 1], [], []>} : vector<32x32xf32>, vector<32x128xf32>, vector<32x128xf32> -> vector<32x128xf32>
    %c2_63 = arith.constant 2 : index
    %c0_64 = arith.constant 0 : index
    %c0_65 = arith.constant 0 : index
    %73 = vector.load %arg3[%c2_63, %c0_64, %c0_65] : memref<3x128x128xf32, #tpu.memory_space<vmem>>, vector<1x128x128xf32>
    %74 = vector.shape_cast %73 : vector<1x128x128xf32> to vector<128x128xf32>
    %cst_66 = arith.constant dense<0.000000e+00> : vector<32x128xf32>
    %75 = tpu.matmul %72, %74, %cst_66 {dimension_numbers = #tpu.dot_dimension_numbers<[1], [0], [0], [1], [0, 0, 1, 1], [], []>} : vector<32x128xf32>, vector<128x128xf32>, vector<32x128xf32> -> vector<32x128xf32>
    %76 = arith.addf %69, %75 : vector<32x128xf32>
    %cst_67 = arith.constant dense<0.000000e+00> : vector<32x128xf32>
    %77 = tpu.matmul %76, %0, %cst_67 {dimension_numbers = #tpu.dot_dimension_numbers<[1], [0], [0], [1], [0, 0, 1, 1], [], []>} : vector<32x128xf32>, vector<128x128xf32>, vector<32x128xf32> -> vector<32x128xf32>
    %cst_68 = arith.constant dense<0.000000e+00> : vector<128xf32>
    %78 = vector.multi_reduction <add>, %77, %cst_68 [0] : vector<32x128xf32> to vector<128xf32>
    %79 = vector.shape_cast %78 : vector<128xf32> to vector<1x128xf32>
    %80 = arith.mulf %76, %76 : vector<32x128xf32>
    %cst_69 = arith.constant dense<0.000000e+00> : vector<32x128xf32>
    %81 = tpu.matmul %80, %0, %cst_69 {dimension_numbers = #tpu.dot_dimension_numbers<[1], [0], [0], [1], [0, 0, 1, 1], [], []>} : vector<32x128xf32>, vector<128x128xf32>, vector<32x128xf32> -> vector<32x128xf32>
    %cst_70 = arith.constant dense<0.000000e+00> : vector<128xf32>
    %82 = vector.multi_reduction <add>, %81, %cst_70 [0] : vector<32x128xf32> to vector<128xf32>
    %83 = vector.shape_cast %82 : vector<128xf32> to vector<1x128xf32>
    %cst_71 = arith.constant 0.001953125 : f32
    %84 = vector.broadcast %cst_71 : f32 to vector<1x128xf32>
    %85 = arith.mulf %79, %84 : vector<1x128xf32>
    %cst_72 = arith.constant 0.001953125 : f32
    %86 = vector.broadcast %cst_72 : f32 to vector<1x128xf32>
    %87 = arith.mulf %83, %86 : vector<1x128xf32>
    %88 = arith.mulf %85, %85 : vector<1x128xf32>
    %89 = arith.subf %87, %88 : vector<1x128xf32>
    %cst_73 = arith.constant 0.000000e+00 : f32
    %90 = vector.broadcast %cst_73 : f32 to vector<1x128xf32>
    %91 = arith.maximumf %89, %90 : vector<1x128xf32>
    %cst_74 = arith.constant 9.99999974E-6 : f32
    %92 = vector.broadcast %cst_74 : f32 to vector<1x128xf32>
    %93 = arith.addf %91, %92 : vector<1x128xf32>
    %94 = math.rsqrt %93 : vector<1x128xf32>
    %95 = arith.mulf %53, %94 : vector<1x128xf32>
    %96 = arith.mulf %85, %95 : vector<1x128xf32>
    %97 = arith.subf %54, %96 : vector<1x128xf32>
    %98 = vector.broadcast %95 : vector<1x128xf32> to vector<32x128xf32>
    %99 = arith.mulf %76, %98 : vector<32x128xf32>
    %100 = vector.broadcast %97 : vector<1x128xf32> to vector<32x128xf32>
    %101 = arith.addf %99, %100 : vector<32x128xf32>
    %cst_75 = arith.constant 0.000000e+00 : f32
    %102 = vector.broadcast %cst_75 : f32 to vector<32x128xf32>
    %103 = arith.maximumf %101, %102 : vector<32x128xf32>
    %c0_76 = arith.constant 0 : index
    %c0_77 = arith.constant 0 : index
    %104 = vector.load %arg9[%c0_76, %c0_77] : memref<32x128xf32, #tpu.memory_space<vmem>>, vector<32x128xf32>
    tpu.vector_store %arg9[%c0_76, %c0_77], %103 {strides = array<i32>} : memref<32x128xf32, #tpu.memory_space<vmem>>, vector<32x128xf32>,
    return
  }
}

</mosaic_0001>

<bundles_post_ra>
// kernel: eq.96
= control target key start
LH: loop header
LB: loop body
LE: loop exit
PB: predicated region body
PF: predicated region fallthrough
CT: control target
= control target key end

     0   :  { %s131_s10 = smov 120   ;;  %s132_s11 = smov 104   ;;  %vm3_vm0 = vcmask 64512   ;;  %vm9_vm1 = vcmask 1048512   ;;  %vm15_vm2 = vcmask 982912   ;;  %vm21_vm3 = vcmask 917312   ;;  %s207_s0 = inlined_call_operand.vmem [shape: s32[16,8], index: 0, kind: input, shape index: {}]   ;;  %s208_s1 = inlined_call_operand.vmem [shape: s32[128], index: 1, kind: output, shape index: {}]  }
   0x1   :  { %v101_v0 = vld [vmem:[%s207_s0 + $0xf] sm:$0x1]   ;;  %v103_v1 = vld [vmem:[%s207_s0 + $0xd] sm:$0x1]   ;;  %v105_v2 = vld [vmem:[%s207_s0 + $0xb] sm:$0x1]  }
   0x2   :  { %7 = vrot.lane.b32.xlu0 %v101_v0, %s131_s10  ;;  %19 = vrot.lane.b32.xlu1 %v103_v1, %s132_s11  ;;  %s133_s14 = smov 88   ;;  %v102_v3 = vld [vmem:[%s207_s0 + $0xe] sm:$0x1]   ;;  %v104_v4 = vld [vmem:[%s207_s0 + $0xc] sm:$0x1]   ;;  %s134_s19 = smov 112  }
   0x3   :  { %31 = vrot.lane.b32.xlu2 %v105_v2, %s133_s14  ;;  %s135_s20 = smov 96   ;;  %v106_v5 = vld [vmem:[%s207_s0 + $0xa] sm:$0x1]   ;;  %s136_s23 = smov 80   ;;  %v107_v6 = vld [vmem:[%s207_s0 + $0x9] sm:$0x1]  }
   0x4   :  { %v108_v7 = vld [vmem:[%s207_s0 + $0x8] sm:$0x1]   ;;  %s137_s28 = smov 72   ;;  %s138_s29 = smov 64   ;;  %v109_v8 = vld [vmem:[%s207_s0 + $0x7] sm:$0x1]  }
   0x5   :  { %s139_s3 = smov 56   ;;  %v110_v9 = vld [vmem:[%s207_s0 + $0x6] sm:$0x1]   ;;  %v111_v10 = vld [vmem:[%s207_s0 + $0x5] sm:$0x1]   ;;  %s140_s8 = smov 48  }
   0x6   :  { %s141_s9 = smov 40   ;;  %v112_v11 = vld [vmem:[%s207_s0 + $0x4] sm:$0x1]   ;;  %s142_s12 = smov 32   ;;  %v113_v12 = vld [vmem:[%s207_s0 + $0x3] sm:$0x1]  }
   0x7   :  { %v114_v13 = vld [vmem:[%s207_s0 + $0x2] sm:$0x1]   ;;  %s143_s17 = smov 24   ;;  %s144_s18 = smov 16   ;;  %v115_v14 = vld [vmem:[%s207_s0 + $0x1] sm:$0x1]  }
   0x8   :  { %s145_s21 = smov 8   ;;  %v2_v15 = vld [vmem:[%s207_s0] sm:$0x1]   ;;  %vm27_vm4 = vcmask 851712   ;;  %vm33_vm5 = vcmask 786112   ;;  %vm39_vm6 = vcmask 720512  }
   0x9   :  { %4 = vst.msk [vmem:[#allocation0] sm:$0x1] %vm3_vm0, %v2_v15   ;;  %vm45_vm7 = vcmask 654912   ;;  %vm51_vm8 = vcmask 589312   ;;  %vm57_vm9 = vcmask 523712   ;;  %vm63_vm10 = vcmask 458112  }
   0xa   :  { %13 = vrot.lane.b32.xlu0 %v102_v3, %s134_s19  ;;  %25 = vrot.lane.b32.xlu1 %v104_v4, %s135_s20  ;;  %vm69_vm11 = vcmask 392512   ;;  %vm75_vm12 = vcmask 326912   ;;  %vm81_vm13 = vcmask 261312   ;;  %vm87_vm14 = vcmask 195712  }
   0xb   :  { %37 = vrot.lane.b32.xlu2 %v106_v5, %s136_s23  ;;  %vm93_vm15 = vcmask 130112  }
  0x12   :  { %43 = vrot.lane.b32.xlu0 %v107_v6, %s137_s28  ;;  %49 = vrot.lane.b32.xlu1 %v108_v7, %s138_s29 }
  0x13   :  { %55 = vrot.lane.b32.xlu2 %v109_v8, %s139_s3 }
  0x1a   :  { %61 = vrot.lane.b32.xlu0 %v110_v9, %s140_s8  ;;  %67 = vrot.lane.b32.xlu1 %v111_v10, %s141_s9 }
  0x1b   :  { %73 = vrot.lane.b32.xlu2 %v112_v11, %s142_s12 }
  0x22   :  { %79 = vrot.lane.b32.xlu0 %v113_v12, %s143_s17  ;;  %85 = vrot.lane.b32.xlu1 %v114_v13, %s144_s18 }
  0x23   :  { %91 = vrot.lane.b32.xlu2 %v115_v14, %s145_s21 }
  0x5d   :  { %v32_v16 = vpop.permute.xlu2 %31  }
  0x65   :  { %v38_v17 = vpop.permute.xlu2 %37  }
  0x6d   :  { %v56_v18 = vpop.permute.xlu2 %55  }
  0x74   :  { %v8_v19 = vpop.permute.xlu0 %7   ;;  %v20_v20 = vpop.permute.xlu1 %19  }
  0x75   :  { %10 = vst.msk [vmem:[#allocation0] sm:$0x1] %vm9_vm1, %v8_v19   ;;  %v74_v21 = vpop.permute.xlu2 %73  }
  0x7c   :  { %v14_v22 = vpop.permute.xlu0 %13   ;;  %v26_v23 = vpop.permute.xlu1 %25  }
  0x7d   :  { %16 = vst.msk [vmem:[#allocation0] sm:$0x1] %vm15_vm2, %v14_v22   ;;  %v92_v24 = vpop.permute.xlu2 %91  }
  0x7e   :  { %22 = vst.msk [vmem:[#allocation0] sm:$0x1] %vm21_vm3, %v20_v20  }
  0x7f   :  { %28 = vst.msk [vmem:[#allocation0] sm:$0x1] %vm27_vm4, %v26_v23  }
  0x80   :  { %34 = vst.msk [vmem:[#allocation0] sm:$0x1] %vm33_vm5, %v32_v16  }
  0x81   :  { %40 = vst.msk [vmem:[#allocation0] sm:$0x1] %vm39_vm6, %v38_v17  }
  0x84   :  { %v44_v25 = vpop.permute.xlu0 %43   ;;  %v50_v26 = vpop.permute.xlu1 %49  }
  0x85   :  { %46 = vst.msk [vmem:[#allocation0] sm:$0x1] %vm45_vm7, %v44_v25  }
  0x86   :  { %52 = vst.msk [vmem:[#allocation0] sm:$0x1] %vm51_vm8, %v50_v26  }
  0x87   :  { %58 = vst.msk [vmem:[#allocation0] sm:$0x1] %vm57_vm9, %v56_v18  }
  0x8c   :  { %v62_v27 = vpop.permute.xlu0 %61   ;;  %v68_v28 = vpop.permute.xlu1 %67  }
  0x8d   :  { %64 = vst.msk [vmem:[#allocation0] sm:$0x1] %vm63_vm10, %v62_v27  }
  0x8e   :  { %70 = vst.msk [vmem:[#allocation0] sm:$0x1] %vm69_vm11, %v68_v28  }
  0x8f   :  { %76 = vst.msk [vmem:[#allocation0] sm:$0x1] %vm75_vm12, %v74_v21  }
  0x94   :  { %v80_v29 = vpop.permute.xlu0 %79   ;;  %v86_v30 = vpop.permute.xlu1 %85  }
  0x95   :  { %82 = vst.msk [vmem:[#allocation0] sm:$0x1] %vm81_vm13, %v80_v29  }
  0x96   :  { %88 = vst.msk [vmem:[#allocation0] sm:$0x1] %vm87_vm14, %v86_v30  }
  0x97   :  { %94 = vst.msk [vmem:[#allocation0] sm:$0x1] %vm93_vm15, %v92_v24  }
  0x9e   :  { %v97_v31 = vld [vmem:[#allocation0] sm:$0x1] }
  0x9f   :  { %100 = vst [vmem:[%s208_s1] sm:$0x1] %v97_v31 }

// kernel: tile.35
= control target key start
LH: loop header
LB: loop body
LE: loop exit
PB: predicated region body
PF: predicated region fallthrough
CT: control target
= control target key end

     0   :  { %s28_s0 = inlined_call_operand.vmem [shape: f32[8], index: 0, kind: input, shape index: {}]   ;;  %s29_s1 = inlined_call_operand.vmem [shape: f32[16,8], index: 1, kind: output, shape index: {}]  }
   0x1   :  { %v4_v0 = vld [vmem:[%s28_s0] ss:$0 sm:$0xff] }
   0x2   :  { %5 = vst [vmem:[%s29_s1] sm:$0xff] %v4_v0 }
   0x3   :  { %8 = vst [vmem:[%s29_s1 + $0x8] sm:$0xff] %v4_v0 }

// kernel: tile.36
= control target key start
LH: loop header
LB: loop body
LE: loop exit
PB: predicated region body
PF: predicated region fallthrough
CT: control target
= control target key end

     0   :  { %s131_s10 = smov 120   ;;  %s132_s11 = smov 104   ;;  %vm3_vm0 = vcmask 64512   ;;  %vm9_vm1 = vcmask 1048512   ;;  %vm15_vm2 = vcmask 982912   ;;  %vm21_vm3 = vcmask 917312   ;;  %s207_s0 = inlined_call_operand.vmem [shape: f32[16,8], index: 0, kind: input, shape index: {}]   ;;  %s208_s1 = inlined_call_operand.vmem [shape: f32[1,128], index: 1, kind: output, shape index: {}]  }
   0x1   :  { %v101_v0 = vld [vmem:[%s207_s0 + $0xf] sm:$0x1]   ;;  %v103_v1 = vld [vmem:[%s207_s0 + $0xd] sm:$0x1]   ;;  %v105_v2 = vld [vmem:[%s207_s0 + $0xb] sm:$0x1]  }
   0x2   :  { %7 = vrot.lane.b32.xlu0 %v101_v0, %s131_s10  ;;  %19 = vrot.lane.b32.xlu1 %v103_v1, %s132_s11  ;;  %s133_s14 = smov 88   ;;  %v102_v3 = vld [vmem:[%s207_s0 + $0xe] sm:$0x1]   ;;  %v104_v4 = vld [vmem:[%s207_s0 + $0xc] sm:$0x1]   ;;  %s134_s19 = smov 112  }
   0x3   :  { %31 = vrot.lane.b32.xlu2 %v105_v2, %s133_s14  ;;  %s135_s20 = smov 96   ;;  %v106_v5 = vld [vmem:[%s207_s0 + $0xa] sm:$0x1]   ;;  %s136_s23 = smov 80   ;;  %v107_v6 = vld [vmem:[%s207_s0 + $0x9] sm:$0x1]  }
   0x4   :  { %v108_v7 = vld [vmem:[%s207_s0 + $0x8] sm:$0x1]   ;;  %s137_s28 = smov 72   ;;  %s138_s29 = smov 64   ;;  %v109_v8 = vld [vmem:[%s207_s0 + $0x7] sm:$0x1]  }
   0x5   :  { %s139_s3 = smov 56   ;;  %v110_v9 = vld [vmem:[%s207_s0 + $0x6] sm:$0x1]   ;;  %v111_v10 = vld [vmem:[%s207_s0 + $0x5] sm:$0x1]   ;;  %s140_s8 = smov 48  }
   0x6   :  { %s141_s9 = smov 40   ;;  %v112_v11 = vld [vmem:[%s207_s0 + $0x4] sm:$0x1]   ;;  %s142_s12 = smov 32   ;;  %v113_v12 = vld [vmem:[%s207_s0 + $0x3] sm:$0x1]  }
   0x7   :  { %v114_v13 = vld [vmem:[%s207_s0 + $0x2] sm:$0x1]   ;;  %s143_s17 = smov 24   ;;  %s144_s18 = smov 16   ;;  %v115_v14 = vld [vmem:[%s207_s0 + $0x1] sm:$0x1]  }
   0x8   :  { %s145_s21 = smov 8   ;;  %v2_v15 = vld [vmem:[%s207_s0] sm:$0x1]   ;;  %vm27_vm4 = vcmask 851712   ;;  %vm33_vm5 = vcmask 786112   ;;  %vm39_vm6 = vcmask 720512  }
   0x9   :  { %4 = vst.msk [vmem:[#allocation0] sm:$0x1] %vm3_vm0, %v2_v15   ;;  %vm45_vm7 = vcmask 654912   ;;  %vm51_vm8 = vcmask 589312   ;;  %vm57_vm9 = vcmask 523712   ;;  %vm63_vm10 = vcmask 458112  }
   0xa   :  { %13 = vrot.lane.b32.xlu0 %v102_v3, %s134_s19  ;;  %25 = vrot.lane.b32.xlu1 %v104_v4, %s135_s20  ;;  %vm69_vm11 = vcmask 392512   ;;  %vm75_vm12 = vcmask 326912   ;;  %vm81_vm13 = vcmask 261312   ;;  %vm87_vm14 = vcmask 195712  }
   0xb   :  { %37 = vrot.lane.b32.xlu2 %v106_v5, %s136_s23  ;;  %vm93_vm15 = vcmask 130112  }
  0x12   :  { %43 = vrot.lane.b32.xlu0 %v107_v6, %s137_s28  ;;  %49 = vrot.lane.b32.xlu1 %v108_v7, %s138_s29 }
  0x13   :  { %55 = vrot.lane.b32.xlu2 %v109_v8, %s139_s3 }
  0x1a   :  { %61 = vrot.lane.b32.xlu0 %v110_v9, %s140_s8  ;;  %67 = vrot.lane.b32.xlu1 %v111_v10, %s141_s9 }
  0x1b   :  { %73 = vrot.lane.b32.xlu2 %v112_v11, %s142_s12 }
  0x22   :  { %79 = vrot.lane.b32.xlu0 %v113_v12, %s143_s17  ;;  %85 = vrot.lane.b32.xlu1 %v114_v13, %s144_s18 }
  0x23   :  { %91 = vrot.lane.b32.xlu2 %v115_v14, %s145_s21 }
  0x5d   :  { %v32_v16 = vpop.permute.xlu2 %31  }
  0x65   :  { %v38_v17 = vpop.permute.xlu2 %37  }
  0x6d   :  { %v56_v18 = vpop.permute.xlu2 %55  }
  0x74   :  { %v8_v19 = vpop.permute.xlu0 %7   ;;  %v20_v20 = vpop.permute.xlu1 %19  }
  0x75   :  { %10 = vst.msk [vmem:[#allocation0] sm:$0x1] %vm9_vm1, %v8_v19   ;;  %v74_v21 = vpop.permute.xlu2 %73  }
  0x7c   :  { %v14_v22 = vpop.permute.xlu0 %13   ;;  %v26_v23 = vpop.permute.xlu1 %25  }
  0x7d   :  { %16 = vst.msk [vmem:[#allocation0] sm:$0x1] %vm15_vm2, %v14_v22   ;;  %v92_v24 = vpop.permute.xlu2 %91  }
  0x7e   :  { %22 = vst.msk [vmem:[#allocation0] sm:$0x1] %vm21_vm3, %v20_v20  }
  0x7f   :  { %28 = vst.msk [vmem:[#allocation0] sm:$0x1] %vm27_vm4, %v26_v23  }
  0x80   :  { %34 = vst.msk [vmem:[#allocation0] sm:$0x1] %vm33_vm5, %v32_v16  }
  0x81   :  { %40 = vst.msk [vmem:[#allocation0] sm:$0x1] %vm39_vm6, %v38_v17  }
  0x84   :  { %v44_v25 = vpop.permute.xlu0 %43   ;;  %v50_v26 = vpop.permute.xlu1 %49  }
  0x85   :  { %46 = vst.msk [vmem:[#allocation0] sm:$0x1] %vm45_vm7, %v44_v25  }
  0x86   :  { %52 = vst.msk [vmem:[#allocation0] sm:$0x1] %vm51_vm8, %v50_v26  }
  0x87   :  { %58 = vst.msk [vmem:[#allocation0] sm:$0x1] %vm57_vm9, %v56_v18  }
  0x8c   :  { %v62_v27 = vpop.permute.xlu0 %61   ;;  %v68_v28 = vpop.permute.xlu1 %67  }
  0x8d   :  { %64 = vst.msk [vmem:[#allocation0] sm:$0x1] %vm63_vm10, %v62_v27  }
  0x8e   :  { %70 = vst.msk [vmem:[#allocation0] sm:$0x1] %vm69_vm11, %v68_v28  }
  0x8f   :  { %76 = vst.msk [vmem:[#allocation0] sm:$0x1] %vm75_vm12, %v74_v21  }
  0x94   :  { %v80_v29 = vpop.permute.xlu0 %79   ;;  %v86_v30 = vpop.permute.xlu1 %85  }
  0x95   :  { %82 = vst.msk [vmem:[#allocation0] sm:$0x1] %vm81_vm13, %v80_v29  }
  0x96   :  { %88 = vst.msk [vmem:[#allocation0] sm:$0x1] %vm87_vm14, %v86_v30  }
  0x97   :  { %94 = vst.msk [vmem:[#allocation0] sm:$0x1] %vm93_vm15, %v92_v24  }
  0x9e   :  { %v97_v31 = vld [vmem:[#allocation0] sm:$0x1] }
  0x9f   :  { %100 = vst [vmem:[%s208_s1] sm:$0x1] %v97_v31 }

// kernel: first_block.1
= control target key start
LH: loop header
LB: loop body
LE: loop exit
PB: predicated region body
PF: predicated region fallthrough
CT: control target
= control target key end

     0   :  { %vm58_vm0 = vcmask 261120   ;;  %vm163_vm1 = vcmask 523264   ;;  %s1516_s0 = inlined_call_operand.vmem [shape: f32[32,64], index: 0, kind: input, shape index: {}]   ;;  %s1517_s1 = inlined_call_operand.vmem [shape: f32[3,32,32], index: 1, kind: input, shape index: {}]   ;;  %s1518_s2 = inlined_call_operand.vmem [shape: f32[3,64,128], index: 2, kind: input, shape index: {}]   ;;  %s1519_s8 = inlined_call_operand.vmem [shape: f32[128,128], index: 8, kind: input, shape index: {}]   ;;  %s1520_s4 = inlined_call_operand.vmem [shape: f32[1,128], index: 4, kind: input, shape index: {}]   ;;  %s1521_s5 = inlined_call_operand.vmem [shape: f32[1,128], index: 5, kind: input, shape index: {}]   ;;  %s1522_s3 = inlined_call_operand.vmem [shape: f32[3,128,128], index: 3, kind: input, shape index: {}]   ;;  %s1523_s6 = inlined_call_operand.vmem [shape: f32[1,128], index: 6, kind: input, shape index: {}]   ;;  %s1524_s7 = inlined_call_operand.vmem [shape: f32[1,128], index: 7, kind: input, shape index: {}]   ;;  %s1525_s9 = inlined_call_operand.vmem [shape: f32[32,128], index: 9, kind: output, shape index: {}]  }
   0x1   :  { %v51_v0 = vld [vmem:[%s1516_s0 + $0x18] sm:$0xff]  ;;  %v50_v1 = vld [vmem:[%s1516_s0 + $0x10] sm:$0xff]  ;;  %v49_v2 = vld [vmem:[%s1516_s0 + $0x8] sm:$0xff] }
   0x2   :  { %83 = vmatpush.msra.mxu0 %v51_v0  ;;  %137 = vmatpush.msra.mxu1 %v51_v0  ;;  %v48_v3 = vld [vmem:[%s1516_s0] sm:$0xff]  ;;  %v993_v6 = vld [vmem:[%s1517_s1 + $0x8] sm:$0xff]  ;;  %v1007_v8 = vld [vmem:[%s1517_s1 + $0x10] sm:$0xff] }
   0x3   :  { %v979_v4 = vld [vmem:[%s1517_s1] sm:$0xff]  ;;  %v998_v7 = vld [vmem:[%s1517_s1 + $0x28] sm:$0xff]  ;;  %v1012_v9 = vld [vmem:[%s1517_s1 + $0x30] sm:$0xff] }
   0x4   :  { %84 = vmatpush.msra.mxu0 %v50_v1  ;;  %138 = vmatpush.msra.mxu1 %v50_v1  ;;  %v984_v5 = vld [vmem:[%s1517_s1 + $0x20] sm:$0xff]  ;;  %v1021_v10 = vld [vmem:[%s1517_s1 + $0x18] sm:$0xff]  ;;  %v836_v14 = vld [vmem:[%s1518_s2 + $0x70] sm:$0xff] }
   0x5   :  { %v1026_v11 = vld [vmem:[%s1517_s1 + $0x38] sm:$0xff]  ;;  %v106_v15 = vld [vmem:[%s1518_s2 + $0x30] sm:$0xff]  ;;  %v835_v16 = vld [vmem:[%s1518_s2 + $0x68] sm:$0xff] }
   0x6   :  { %85 = vmatpush.msra.mxu0 %v49_v2  ;;  %139 = vmatpush.msra.mxu1 %v49_v2  ;;  %v837_v12 = vld [vmem:[%s1518_s2 + $0x78] sm:$0xff]  ;;  %v105_v17 = vld [vmem:[%s1518_s2 + $0x28] sm:$0xff]  ;;  %v834_v18 = vld [vmem:[%s1518_s2 + $0x60] sm:$0xff] }
   0x7   :  { %v107_v13 = vld [vmem:[%s1518_s2 + $0x38] sm:$0xff]  ;;  %184 = vmatpush.msra.mxu2 %v837_v12  ;;  %v104_v19 = vld [vmem:[%s1518_s2 + $0x20] sm:$0xff]  ;;  %v832_v23 = vld [vmem:[%s1518_s2 + $0x50] sm:$0xff] }
   0x8   :  { %86 = vmatpush.msra.mxu0 %v48_v3  ;;  %140 = vmatpush.msra.mxu1 %v48_v3  ;;  %v1059_v20 = vld [vmem:[%s1517_s1 + $0x40] sm:$0xff]  ;;  %v833_v21 = vld [vmem:[%s1518_s2 + $0x58] sm:$0xff]  ;;  %v102_v24 = vld [vmem:[%s1518_s2 + $0x10] sm:$0xff] }
   0x9   :  { %818 = vmatmul.msk.f32.vlgmr.msra.gmra.mxu0 %vm58_vm0, %v979_v4  ;;  %826 = vmatmul.msk.f32.vlgmr.msra.gmra.mxu1 %vm58_vm0, %v984_v5  ;;  %v103_v22 = vld [vmem:[%s1518_s2 + $0x18] sm:$0xff]  ;;  %v831_v25 = vld [vmem:[%s1518_s2 + $0x48] sm:$0xff]  ;;  %v1091_v28 = vld [vmem:[%s1517_s1 + $0x50] sm:$0xff] }
   0xa   :  { %275 = vmatpush.msrb.mxu0 %v51_v0  ;;  %225 = vmatpush.msra.mxu3 %v107_v13  ;;  %v101_v26 = vld [vmem:[%s1518_s2 + $0x8] sm:$0xff]  ;;  %v1098_v29 = vld [vmem:[%s1517_s1 + $0x58] sm:$0xff]  ;;  %v830_v30 = vld [vmem:[%s1518_s2 + $0x40] sm:$0xff] }
   0xb   :  { %185 = vmatpush.msra.mxu2 %v836_v14  ;;  %v1084_v27 = vld [vmem:[%s1517_s1 + $0x48] sm:$0xff]  ;;  %v100_v31 = vld [vmem:[%s1518_s2] sm:$0xff]  ;;  %v861_v32 = vld [vmem:[%s1518_s2 + $0xb8] sm:$0xff] }
   0xc   :  { %276 = vmatpush.msrb.mxu0 %v50_v1  ;;  %226 = vmatpush.msra.mxu3 %v106_v15  ;;  %v860_v33 = vld [vmem:[%s1518_s2 + $0xb0] sm:$0xff]  ;;  %v859_v34 = vld [vmem:[%s1518_s2 + $0xa8] sm:$0xff]  ;;  %v858_v35 = vld [vmem:[%s1518_s2 + $0xa0] sm:$0xff] }
   0xd   :  { %186 = vmatpush.msra.mxu2 %v835_v16  ;;  %321 = vmatpush.msrb.mxu1 %v861_v32  ;;  %v857_v36 = vld [vmem:[%s1518_s2 + $0x98] sm:$0xff]  ;;  %v856_v37 = vld [vmem:[%s1518_s2 + $0x90] sm:$0xff]  ;;  %v855_v38 = vld [vmem:[%s1518_s2 + $0x88] sm:$0xff] }
   0xe   :  { %277 = vmatpush.msrb.mxu0 %v49_v2  ;;  %227 = vmatpush.msra.mxu3 %v105_v17  ;;  %v854_v39 = vld [vmem:[%s1518_s2 + $0x80] sm:$0xff]  ;;  %v1143_v48 = vld [vmem:[%s1519_s8 + $0x78] sm:$0xff]  ;;  %v1154_v53 = vld [vmem:[%s1519_s8 + $0x70] sm:$0xff] }
   0xf   :  { %187 = vmatpush.msra.mxu2 %v834_v18  ;;  %322 = vmatpush.msrb.mxu1 %v860_v33  ;;  %v1161_v54 = vld [vmem:[%s1519_s8 + $0x68] sm:$0xff]  ;;  %v1166_v55 = vld [vmem:[%s1519_s8 + $0x60] sm:$0xff]  ;;  %v1173_v56 = vld [vmem:[%s1519_s8 + $0x58] sm:$0xff] }
  0x10   :  { %278 = vmatpush.msrb.mxu0 %v48_v3  ;;  %228 = vmatpush.msra.mxu3 %v104_v19  ;;  %v1182_v57 = vld [vmem:[%s1519_s8 + $0x50] sm:$0xff]  ;;  %v1189_v58 = vld [vmem:[%s1519_s8 + $0x48] sm:$0xff]  ;;  %v1194_v59 = vld [vmem:[%s1519_s8 + $0x40] sm:$0xff] }
  0x11   :  { %819 = vmatmul.msk.f32.gmra.mxu0 %vm58_vm0, %v993_v6  ;;  %827 = vmatmul.msk.f32.gmra.mxu1 %vm58_vm0, %v998_v7  ;;  %v1201_v60 = vld [vmem:[%s1519_s8 + $0x38] sm:$0xff]  ;;  %v1210_v61 = vld [vmem:[%s1519_s8 + $0x30] sm:$0xff]  ;;  %v1217_v62 = vld [vmem:[%s1519_s8 + $0x28] sm:$0xff] }
  0x12   :  { %188 = vmatpush.msra.mxu2 %v833_v21  ;;  %229 = vmatpush.msra.mxu3 %v103_v22  ;;  %v1222_v63 = vld [vmem:[%s1519_s8 + $0x20] sm:$0xff]  ;;  %v1229_v0 = vld [vmem:[%s1519_s8 + $0x18] sm:$0xff]  ;;  %v1238_v1 = vld [vmem:[%s1519_s8 + $0x10] sm:$0xff] }
  0x13   :  { %323 = vmatpush.msrb.mxu1 %v859_v34  ;;  %v1245_v2 = vld [vmem:[%s1519_s8 + $0x8] sm:$0xff]  ;;  %v1252_v3 = vld [vmem:[%s1519_s8] sm:$0xff] }
  0x14   :  { %189 = vmatpush.msra.mxu2 %v832_v23  ;;  %230 = vmatpush.msra.mxu3 %v102_v24 }
  0x15   :  { %324 = vmatpush.msrb.mxu1 %v858_v35 }
  0x16   :  { %190 = vmatpush.msra.mxu2 %v831_v25  ;;  %231 = vmatpush.msra.mxu3 %v101_v26 }
  0x17   :  { %325 = vmatpush.msrb.mxu1 %v857_v36 }
  0x18   :  { %191 = vmatpush.msra.mxu2 %v830_v30  ;;  %232 = vmatpush.msra.mxu3 %v100_v31 }
  0x19   :  { %820 = vmatmul.msk.f32.gmra.mxu0 %vm58_vm0, %v1007_v8  ;;  %828 = vmatmul.msk.f32.gmra.mxu1 %vm58_vm0, %v1012_v9 }
  0x1a   :  { %326 = vmatpush.msrb.mxu1 %v856_v37  ;;  %346 = vmatpush.msrb.mxu2 %v1143_v48 }
  0x1b   :  { %388 = vmatpush.msrb.mxu3 %v1143_v48 }
  0x1c   :  { %327 = vmatpush.msrb.mxu1 %v855_v38  ;;  %347 = vmatpush.msrb.mxu2 %v1154_v53 }
  0x1d   :  { %389 = vmatpush.msrb.mxu3 %v1154_v53 }
  0x1e   :  { %328 = vmatpush.msrb.mxu1 %v854_v39  ;;  %348 = vmatpush.msrb.mxu2 %v1161_v54 }
  0x1f   :  { %390 = vmatpush.msrb.mxu3 %v1161_v54 }
  0x20   :  { %349 = vmatpush.msrb.mxu2 %v1166_v55 }
  0x21   :  { %821 = vmatmul.msk.f32.gmra.mxu0 %vm58_vm0, %v1021_v10  ;;  %829 = vmatmul.msk.f32.gmra.mxu1 %vm58_vm0, %v1026_v11 }
  0x22   :  { %391 = vmatpush.msrb.mxu3 %v1166_v55  ;;  %350 = vmatpush.msrb.mxu2 %v1173_v56 }
  0x24   :  { %392 = vmatpush.msrb.mxu3 %v1173_v56  ;;  %351 = vmatpush.msrb.mxu2 %v1182_v57 }
  0x26   :  { %393 = vmatpush.msrb.mxu3 %v1182_v57  ;;  %352 = vmatpush.msrb.mxu2 %v1189_v58 }
  0x28   :  { %394 = vmatpush.msrb.mxu3 %v1189_v58  ;;  %353 = vmatpush.msrb.mxu2 %v1194_v59 }
  0x29   :  { %850 = vmatmul.msk.f32.vlgmr.msrb.gmra.mxu0 %vm58_vm0, %v1059_v20 }
  0x2a   :  { %395 = vmatpush.msrb.mxu3 %v1194_v59  ;;  %354 = vmatpush.msrb.mxu2 %v1201_v60 }
  0x2c   :  { %396 = vmatpush.msrb.mxu3 %v1201_v60  ;;  %355 = vmatpush.msrb.mxu2 %v1210_v61 }
  0x2e   :  { %397 = vmatpush.msrb.mxu3 %v1210_v61  ;;  %356 = vmatpush.msrb.mxu2 %v1217_v62 }
  0x30   :  { %398 = vmatpush.msrb.mxu3 %v1217_v62  ;;  %357 = vmatpush.msrb.mxu2 %v1222_v63 }
  0x31   :  { %851 = vmatmul.msk.f32.gmra.mxu0 %vm58_vm0, %v1084_v27 }
  0x32   :  { %399 = vmatpush.msrb.mxu3 %v1222_v63  ;;  %358 = vmatpush.msrb.mxu2 %v1229_v0 }
  0x34   :  { %400 = vmatpush.msrb.mxu3 %v1229_v0  ;;  %359 = vmatpush.msrb.mxu2 %v1238_v1 }
  0x36   :  { %401 = vmatpush.msrb.mxu3 %v1238_v1  ;;  %360 = vmatpush.msrb.mxu2 %v1245_v2 }
  0x38   :  { %402 = vmatpush.msrb.mxu3 %v1245_v2  ;;  %361 = vmatpush.msrb.mxu2 %v1252_v3 }
  0x39   :  { %852 = vmatmul.msk.f32.gmra.mxu0 %vm58_vm0, %v1091_v28 }
  0x3a   :  { %403 = vmatpush.msrb.mxu3 %v1252_v3 }
  0x41   :  { %853 = vmatmul.msk.f32.gmra.mxu0 %vm58_vm0, %v1098_v29 }
  0x86   :  { %v88_v40 = vpop.f32.mrf.mxu0  ;;  %v142_v41 = vpop.f32.mrf.mxu1 }
  0x87   :  { %838 = vmatmul.msk.f32.vlgmr.msra.gmra.mxu2 %vm163_vm1, %v142_v41  ;;  %842 = vmatmul.msk.f32.vlgmr.msra.gmra.mxu3 %vm163_vm1, %v88_v40 }
  0x8e   :  { %v91_v42 = vpop.f32.mrf.mxu0  ;;  %v145_v43 = vpop.f32.mrf.mxu1 }
  0x8f   :  { %839 = vmatmul.msk.f32.gmra.mxu2 %vm163_vm1, %v145_v43  ;;  %843 = vmatmul.msk.f32.gmra.mxu3 %vm163_vm1, %v91_v42 }
  0x96   :  { %v94_v44 = vpop.f32.mrf.mxu0  ;;  %v148_v45 = vpop.f32.mrf.mxu1 }
  0x97   :  { %840 = vmatmul.msk.f32.gmra.mxu2 %vm163_vm1, %v148_v45  ;;  %844 = vmatmul.msk.f32.gmra.mxu3 %vm163_vm1, %v94_v44 }
  0x9e   :  { %v97_v46 = vpop.f32.mrf.mxu0  ;;  %v151_v47 = vpop.f32.mrf.mxu1 }
  0x9f   :  { %841 = vmatmul.msk.f32.gmra.mxu2 %vm163_vm1, %v151_v47  ;;  %845 = vmatmul.msk.f32.gmra.mxu3 %vm163_vm1, %v97_v46 }
  0xa6   :  { %v280_v49 = vpop.f32.mrf.mxu0 }
  0xa7   :  { %862 = vmatmul.msk.f32.vlgmr.msrb.gmra.mxu1 %vm163_vm1, %v280_v49 }
  0xae   :  { %v283_v50 = vpop.f32.mrf.mxu0 }
  0xaf   :  { %863 = vmatmul.msk.f32.gmra.mxu1 %vm163_vm1, %v283_v50 }
  0xb6   :  { %v286_v51 = vpop.f32.mrf.mxu0 }
  0xb7   :  { %864 = vmatmul.msk.f32.gmra.mxu1 %vm163_vm1, %v286_v51 }
  0xbe   :  { %v289_v52 = vpop.f32.mrf.mxu0 }
  0xbf   :  { %865 = vmatmul.msk.f32.gmra.mxu1 %vm163_vm1, %v289_v52 }
 0x10a   :  { %v193_v12 = vpop.f32.mrf.mxu2  ;;  %v234_v13 = vpop.f32.mrf.mxu3 }
 0x10b   :  { %v235_v14 = vadd.f32 %v234_v13, %v193_v12 }
 0x112   :  { %v196_v15 = vpop.f32.mrf.mxu2  ;;  %v237_v16 = vpop.f32.mrf.mxu3 }
 0x113   :  { %v238_v21 = vadd.f32 %v237_v16, %v196_v15 }
 0x11a   :  { %v199_v24 = vpop.f32.mrf.mxu2  ;;  %v240_v25 = vpop.f32.mrf.mxu3 }
 0x11b   :  { %v241_v30 = vadd.f32 %v240_v25, %v199_v24 }
 0x122   :  { %v202_v34 = vpop.f32.mrf.mxu2  ;;  %v243_v35 = vpop.f32.mrf.mxu3 }
 0x123   :  { %v244_v36 = vadd.f32 %v243_v35, %v202_v34 }
 0x124   :  { %v330_v17 = vpop.f32.mrf.mxu1 }
 0x125   :  { %v1256_v18 = vadd.f32 %v330_v17, %v235_v14 }
 0x127   :  { %362 = vmatmul.f32.vlgmr.msrb.gmra.mxu2 %v1256_v18  ;;  %v384_v19 = vmul.f32 %v1256_v18, %v1256_v18 }
 0x129   :  { %404 = vmatmul.f32.vlgmr.msrb.gmra.mxu3 %v384_v19 }
 0x12c   :  { %v333_v22 = vpop.f32.mrf.mxu1 }
 0x12d   :  { %v1261_v23 = vadd.f32 %v333_v22, %v238_v21 }
 0x12f   :  { %365 = vmatmul.f32.gmra.mxu2 %v1261_v23  ;;  %v385_v26 = vmul.f32 %v1261_v23, %v1261_v23 }
 0x131   :  { %407 = vmatmul.f32.gmra.mxu3 %v385_v26 }
 0x134   :  { %v336_v31 = vpop.f32.mrf.mxu1 }
 0x135   :  { %v1266_v32 = vadd.f32 %v336_v31, %v241_v30 }
 0x137   :  { %368 = vmatmul.f32.gmra.mxu2 %v1266_v32  ;;  %v386_v33 = vmul.f32 %v1266_v32, %v1266_v32 }
 0x139   :  { %410 = vmatmul.f32.gmra.mxu3 %v386_v33 }
 0x13c   :  { %v339_v37 = vpop.f32.mrf.mxu1 }
 0x13d   :  { %v345_v38 = vadd.f32 %v339_v37, %v244_v36 }
 0x13f   :  { %371 = vmatmul.f32.gmra.mxu2 %v345_v38  ;;  %v387_v39 = vmul.f32 %v345_v38, %v345_v38 }
 0x141   :  { %413 = vmatmul.f32.gmra.mxu3 %v387_v39 }
 0x1aa   :  { %v363_v40 = vpop.f32.mrf.mxu2 }
 0x1ac   :  { %v405_v41 = vpop.f32.mrf.mxu3 }
 0x1b2   :  { %v366_v42 = vpop.f32.mrf.mxu2 }
 0x1b3   :  { %v375_v46 = vadd.f32 %v366_v42, %v363_v40 }
 0x1b4   :  { %v408_v43 = vpop.f32.mrf.mxu3 }
 0x1b5   :  { %v417_v47 = vadd.f32 %v408_v43, %v405_v41 }
 0x1ba   :  { %v369_v44 = vpop.f32.mrf.mxu2 }
 0x1bb   :  { %v376_v49 = vadd.f32 %v375_v46, %v369_v44 }
 0x1bc   :  { %v411_v45 = vpop.f32.mrf.mxu3 }
 0x1bd   :  { %v418_v51 = vadd.f32 %v417_v47, %v411_v45  ;;  %v52_v45 = vld [vmem:[%s1520_s4] sm:$0x1] }
 0x1c2   :  { %v372_v50 = vpop.f32.mrf.mxu2 }
 0x1c3   :  { %v377_v52 = vadd.f32 %v376_v49, %v372_v50  ;;  %v53_v50 = vld [vmem:[%s1521_s5] sm:$0x1] }
 0x1c4   :  { %v414_v12 = vpop.f32.mrf.mxu3 }
 0x1c5   :  { %v378_v13 = vrot.slane %v377_v52, 4  ;;  %v419_v14 = vadd.f32 %v418_v51, %v414_v12 }
 0x1c7   :  { %v379_v15 = vadd.f32 %v378_v13, %v377_v52  ;;  %v420_v16 = vrot.slane %v419_v14, 4 }
 0x1c9   :  { %v380_v17 = vrot.slane %v379_v15, 2  ;;  %v421_v19 = vadd.f32 %v420_v16, %v419_v14 }
 0x1cb   :  { %v381_v21 = vadd.f32 %v380_v17, %v379_v15  ;;  %v422_v22 = vrot.slane %v421_v19, 2 }
 0x1cd   :  { %v382_v24 = vrot.slane %v381_v21, 1  ;;  %v423_v25 = vadd.f32 %v422_v22, %v421_v19 }
 0x1cf   :  { %v383_v26 = vadd.f32 %v382_v24, %v381_v21  ;;  %v424_v30 = vrot.slane %v423_v25, 1 }
 0x1d1   :  { %v426_v31 = vmul.f32 0.001953125, %v383_v26  ;;  %v425_v33 = vadd.f32 %v424_v30, %v423_v25 }
 0x1d3   :  { %v428_v34 = vmul.f32 %v426_v31, %v426_v31  ;;  %v427_v35 = vmul.f32 0.001953125, %v425_v33  ;;  %v881_v33 = vld [vmem:[%s1522_s3 + $0xb8] sm:$0xff] }
 0x1d5   :  { %v429_v36 = vsub.f32 %v427_v35, %v428_v34  ;;  %v501_v34 = vld [vmem:[%s1522_s3 + $0x38] sm:$0xff]  ;;  %v880_v35 = vld [vmem:[%s1522_s3 + $0xb0] sm:$0xff] }
 0x1d7   :  { %v430_v37 = vmax.f32 %v429_v36, 0.0  ;;  %v500_v36 = vld [vmem:[%s1522_s3 + $0x30] sm:$0xff] }
 0x1d9   :  { %v431_v39 = vadd.f32 1e-05, %v430_v37  ;;  %v879_v37 = vld [vmem:[%s1522_s3 + $0xa8] sm:$0xff] }
 0x1db   :  { %910 = vrsqrt.f32 %v431_v39  ;;  %vm438_vm3 = vweird.f32 %v431_v39 }
 0x1e1   :  { %v911_v40 = vpop.eup %910 }
 0x1e2   :  { %v433_v41 = vmul.f32 %v911_v40, %v431_v39  ;;  %vm439_vm2 = vweird.f32 %v911_v40  ;;  %v499_v39 = vld [vmem:[%s1522_s3 + $0x28] sm:$0xff] }
 0x1e3   :  { %vm440_vm4 = vmor %vm438_vm3, %vm439_vm2 }
 0x1e4   :  { %v434_v42 = vmul.f32 %v911_v40, %v433_v41  ;;  %v498_v41 = vld [vmem:[%s1522_s3 + $0x20] sm:$0xff] }
 0x1e6   :  { %v435_v43 = vmul.f32 0.5, %v434_v42  ;;  %v877_v42 = vld [vmem:[%s1522_s3 + $0x98] sm:$0xff] }
 0x1e8   :  { %v436_v44 = vsub.f32 1.5, %v435_v43  ;;  %v497_v43 = vld [vmem:[%s1522_s3 + $0x18] sm:$0xff] }
 0x1ea   :  { %v437_v46 = vmul.f32 %v911_v40, %v436_v44  ;;  %v876_v44 = vld [vmem:[%s1522_s3 + $0x90] sm:$0xff] }
 0x1ec   :  { %v441_v47 = vsel %vm440_vm4, %v911_v40, %v437_v46  ;;  %v878_v40 = vld [vmem:[%s1522_s3 + $0xa0] sm:$0xff]  ;;  %v875_v46 = vld [vmem:[%s1522_s3 + $0x88] sm:$0xff] }
 0x1ed   :  { %v442_v49 = vmul.f32 %v441_v47, %v52_v45  ;;  %v496_v45 = vld [vmem:[%s1522_s3 + $0x10] sm:$0xff]  ;;  %v495_v47 = vld [vmem:[%s1522_s3 + $0x8] sm:$0xff] }
 0x1ef   :  { %v443_v51 = vmul.f32 %v442_v49, %v426_v31  ;;  %v446_v52 = vperm.slane %v442_v49, 0  ;;  %v502_v31 = vld [vmem:[%s1522_s3 + $0x40] sm:$0xff]  ;;  %v909_v49 = vld [vmem:[%s1522_s3 + $0x178] sm:$0xff] }
 0x1f1   :  { %v444_v12 = vsub.f32 %v53_v50, %v443_v51  ;;  %v451_v13 = vmul.f32 %v446_v52, %v345_v38  ;;  %v450_v15 = vmul.f32 %v446_v52, %v1266_v32  ;;  %v449_v19 = vmul.f32 %v446_v52, %v1261_v23  ;;  %v503_v23 = vld [vmem:[%s1522_s3 + $0x48] sm:$0xff]  ;;  %v882_v32 = vld [vmem:[%s1522_s3 + $0xc0] sm:$0xff]  ;;  %v908_v50 = vld [vmem:[%s1522_s3 + $0x170] sm:$0xff] }
 0x1f2   :  { %v448_v24 = vmul.f32 %v446_v52, %v1256_v18  ;;  %v883_v18 = vld [vmem:[%s1522_s3 + $0xc8] sm:$0xff]  ;;  %v874_v51 = vld [vmem:[%s1522_s3 + $0x80] sm:$0xff] }
 0x1f3   :  { %v453_v14 = vperm.slane %v444_v12, 0  ;;  %v494_v52 = vld [vmem:[%s1522_s3] sm:$0xff]  ;;  %v907_v12 = vld [vmem:[%s1522_s3 + $0x168] sm:$0xff] }
 0x1f5   :  { %v458_v16 = vadd.f32 %v453_v14, %v451_v13  ;;  %v457_v17 = vadd.f32 %v453_v14, %v450_v15  ;;  %v456_v22 = vadd.f32 %v453_v14, %v449_v19  ;;  %v455_v26 = vadd.f32 %v453_v14, %v448_v24  ;;  %v906_v13 = vld [vmem:[%s1522_s3 + $0x160] sm:$0xff]  ;;  %v905_v14 = vld [vmem:[%s1522_s3 + $0x158] sm:$0xff] }
 0x1f7   :  { %v462_v21 = vmax.f32 %v458_v16, 0.0  ;;  %v461_v25 = vmax.f32 %v457_v17, 0.0  ;;  %v460_v30 = vmax.f32 %v456_v22, 0.0  ;;  %v459_v38 = vmax.f32 %v455_v26, 0.0 }
 0x1f9   :  { %477 = vmatpush.msra.mxu0 %v462_v21  ;;  %522 = vmatpush.msra.mxu1 %v462_v21 }
 0x1fb   :  { %478 = vmatpush.msra.mxu0 %v461_v25  ;;  %523 = vmatpush.msra.mxu1 %v461_v25 }
 0x1fd   :  { %479 = vmatpush.msra.mxu0 %v460_v30  ;;  %524 = vmatpush.msra.mxu1 %v460_v30 }
 0x1ff   :  { %480 = vmatpush.msra.mxu0 %v459_v38  ;;  %525 = vmatpush.msra.mxu1 %v459_v38 }
 0x200   :  { %866 = vmatmul.msk.f32.vlgmr.msra.gmra.mxu0 %vm58_vm0, %v979_v4  ;;  %870 = vmatmul.msk.f32.vlgmr.msra.gmra.mxu1 %vm58_vm0, %v984_v5  ;;  %v889_v4 = vld [vmem:[%s1522_s3 + $0xf8] sm:$0xff] }
 0x201   :  { %626 = vmatpush.msrb.mxu0 %v462_v21  ;;  %v509_v5 = vld [vmem:[%s1522_s3 + $0x78] sm:$0xff]  ;;  %556 = vmatpush.msra.mxu2 %v889_v4 }
 0x202   :  { %585 = vmatpush.msra.mxu3 %v509_v5  ;;  %660 = vmatpush.msrb.mxu1 %v909_v49 }
 0x203   :  { %627 = vmatpush.msrb.mxu0 %v461_v25 }
 0x204   :  { %661 = vmatpush.msrb.mxu1 %v908_v50 }
 0x205   :  { %628 = vmatpush.msrb.mxu0 %v460_v30 }
 0x206   :  { %662 = vmatpush.msrb.mxu1 %v907_v12 }
 0x207   :  { %629 = vmatpush.msrb.mxu0 %v459_v38 }
 0x208   :  { %867 = vmatmul.msk.f32.gmra.mxu0 %vm58_vm0, %v993_v6  ;;  %871 = vmatmul.msk.f32.gmra.mxu1 %vm58_vm0, %v998_v7  ;;  %v888_v6 = vld [vmem:[%s1522_s3 + $0xf0] sm:$0xff] }
 0x209   :  { %v508_v7 = vld [vmem:[%s1522_s3 + $0x70] sm:$0xff]  ;;  %557 = vmatpush.msra.mxu2 %v888_v6  ;;  %663 = vmatpush.msrb.mxu1 %v906_v13 }
 0x20a   :  { %586 = vmatpush.msra.mxu3 %v508_v7 }
 0x20b   :  { %664 = vmatpush.msrb.mxu1 %v905_v14 }
 0x210   :  { %868 = vmatmul.msk.f32.gmra.mxu0 %vm58_vm0, %v1007_v8  ;;  %872 = vmatmul.msk.f32.gmra.mxu1 %vm58_vm0, %v1012_v9  ;;  %v887_v8 = vld [vmem:[%s1522_s3 + $0xe8] sm:$0xff] }
 0x211   :  { %v507_v9 = vld [vmem:[%s1522_s3 + $0x68] sm:$0xff]  ;;  %558 = vmatpush.msra.mxu2 %v887_v8 }
 0x212   :  { %587 = vmatpush.msra.mxu3 %v507_v9 }
 0x218   :  { %869 = vmatmul.msk.f32.gmra.mxu0 %vm58_vm0, %v1021_v10  ;;  %873 = vmatmul.msk.f32.gmra.mxu1 %vm58_vm0, %v1026_v11  ;;  %v886_v10 = vld [vmem:[%s1522_s3 + $0xe0] sm:$0xff] }
 0x219   :  { %v506_v11 = vld [vmem:[%s1522_s3 + $0x60] sm:$0xff]  ;;  %559 = vmatpush.msra.mxu2 %v886_v10 }
 0x21a   :  { %588 = vmatpush.msra.mxu3 %v506_v11 }
 0x220   :  { %890 = vmatmul.msk.f32.vlgmr.msrb.gmra.mxu0 %vm58_vm0, %v1059_v20  ;;  %v885_v20 = vld [vmem:[%s1522_s3 + $0xd8] sm:$0xff] }
 0x221   :  { %560 = vmatpush.msra.mxu2 %v885_v20 }
 0x228   :  { %891 = vmatmul.msk.f32.gmra.mxu0 %vm58_vm0, %v1084_v27  ;;  %v505_v27 = vld [vmem:[%s1522_s3 + $0x58] sm:$0xff] }
 0x229   :  { %589 = vmatpush.msra.mxu3 %v505_v27 }
 0x230   :  { %892 = vmatmul.msk.f32.gmra.mxu0 %vm58_vm0, %v1091_v28  ;;  %v884_v28 = vld [vmem:[%s1522_s3 + $0xd0] sm:$0xff] }
 0x231   :  { %561 = vmatpush.msra.mxu2 %v884_v28 }
 0x233   :  { %562 = vmatpush.msra.mxu2 %v883_v18 }
 0x235   :  { %563 = vmatpush.msra.mxu2 %v882_v32 }
 0x237   :  { %564 = vmatpush.msra.mxu2 %v881_v33 }
 0x238   :  { %893 = vmatmul.msk.f32.gmra.mxu0 %vm58_vm0, %v1098_v29  ;;  %v504_v29 = vld [vmem:[%s1522_s3 + $0x50] sm:$0xff] }
 0x239   :  { %590 = vmatpush.msra.mxu3 %v504_v29  ;;  %565 = vmatpush.msra.mxu2 %v880_v35 }
 0x23b   :  { %591 = vmatpush.msra.mxu3 %v503_v23  ;;  %566 = vmatpush.msra.mxu2 %v879_v37 }
 0x23d   :  { %592 = vmatpush.msra.mxu3 %v502_v31  ;;  %567 = vmatpush.msra.mxu2 %v878_v40 }
 0x23f   :  { %593 = vmatpush.msra.mxu3 %v501_v34  ;;  %568 = vmatpush.msra.mxu2 %v877_v42 }
 0x241   :  { %594 = vmatpush.msra.mxu3 %v500_v36  ;;  %569 = vmatpush.msra.mxu2 %v876_v44 }
 0x243   :  { %595 = vmatpush.msra.mxu3 %v499_v39  ;;  %570 = vmatpush.msra.mxu2 %v875_v46 }
 0x245   :  { %596 = vmatpush.msra.mxu3 %v498_v41  ;;  %571 = vmatpush.msra.mxu2 %v874_v51 }
 0x247   :  { %597 = vmatpush.msra.mxu3 %v497_v43  ;;  %693 = vmatpush.msrb.mxu2 %v1143_v48 }
 0x249   :  { %598 = vmatpush.msra.mxu3 %v496_v45  ;;  %694 = vmatpush.msrb.mxu2 %v1154_v53 }
 0x24b   :  { %599 = vmatpush.msra.mxu3 %v495_v47  ;;  %695 = vmatpush.msrb.mxu2 %v1161_v54 }
 0x24d   :  { %600 = vmatpush.msra.mxu3 %v494_v52  ;;  %696 = vmatpush.msrb.mxu2 %v1166_v55 }
 0x24f   :  { %735 = vmatpush.msrb.mxu3 %v1143_v48  ;;  %v904_v48 = vld [vmem:[%s1522_s3 + $0x150] sm:$0xff]  ;;  %697 = vmatpush.msrb.mxu2 %v1173_v56 }
 0x250   :  { %665 = vmatpush.msrb.mxu1 %v904_v48 }
 0x251   :  { %736 = vmatpush.msrb.mxu3 %v1154_v53  ;;  %v903_v53 = vld [vmem:[%s1522_s3 + $0x148] sm:$0xff]  ;;  %698 = vmatpush.msrb.mxu2 %v1182_v57 }
 0x252   :  { %666 = vmatpush.msrb.mxu1 %v903_v53 }
 0x253   :  { %737 = vmatpush.msrb.mxu3 %v1161_v54  ;;  %699 = vmatpush.msrb.mxu2 %v1189_v58  ;;  %v902_v54 = vld [vmem:[%s1522_s3 + $0x140] sm:$0xff] }
 0x254   :  { %667 = vmatpush.msrb.mxu1 %v902_v54 }
 0x255   :  { %738 = vmatpush.msrb.mxu3 %v1166_v55  ;;  %v901_v55 = vld [vmem:[%s1522_s3 + $0x138] sm:$0xff]  ;;  %700 = vmatpush.msrb.mxu2 %v1194_v59 }
 0x256   :  { %668 = vmatpush.msrb.mxu1 %v901_v55 }
 0x257   :  { %739 = vmatpush.msrb.mxu3 %v1173_v56  ;;  %v900_v56 = vld [vmem:[%s1522_s3 + $0x130] sm:$0xff]  ;;  %701 = vmatpush.msrb.mxu2 %v1201_v60 }
 0x258   :  { %669 = vmatpush.msrb.mxu1 %v900_v56 }
 0x259   :  { %740 = vmatpush.msrb.mxu3 %v1182_v57  ;;  %v899_v57 = vld [vmem:[%s1522_s3 + $0x128] sm:$0xff]  ;;  %702 = vmatpush.msrb.mxu2 %v1210_v61 }
 0x25a   :  { %670 = vmatpush.msrb.mxu1 %v899_v57 }
 0x25b   :  { %741 = vmatpush.msrb.mxu3 %v1189_v58  ;;  %703 = vmatpush.msrb.mxu2 %v1217_v62  ;;  %v898_v58 = vld [vmem:[%s1522_s3 + $0x120] sm:$0xff] }
 0x25c   :  { %671 = vmatpush.msrb.mxu1 %v898_v58 }
 0x25d   :  { %742 = vmatpush.msrb.mxu3 %v1194_v59  ;;  %v897_v59 = vld [vmem:[%s1522_s3 + $0x118] sm:$0xff]  ;;  %704 = vmatpush.msrb.mxu2 %v1222_v63 }
 0x25e   :  { %672 = vmatpush.msrb.mxu1 %v897_v59 }
 0x25f   :  { %743 = vmatpush.msrb.mxu3 %v1201_v60  ;;  %v896_v60 = vld [vmem:[%s1522_s3 + $0x110] sm:$0xff]  ;;  %705 = vmatpush.msrb.mxu2 %v1229_v0 }
 0x260   :  { %673 = vmatpush.msrb.mxu1 %v896_v60 }
 0x261   :  { %744 = vmatpush.msrb.mxu3 %v1210_v61  ;;  %v895_v61 = vld [vmem:[%s1522_s3 + $0x108] sm:$0xff]  ;;  %706 = vmatpush.msrb.mxu2 %v1238_v1 }
 0x262   :  { %674 = vmatpush.msrb.mxu1 %v895_v61 }
 0x263   :  { %745 = vmatpush.msrb.mxu3 %v1217_v62  ;;  %707 = vmatpush.msrb.mxu2 %v1245_v2 }
 0x265   :  { %746 = vmatpush.msrb.mxu3 %v1222_v63  ;;  %v894_v63 = vld [vmem:[%s1522_s3 + $0x100] sm:$0xff]  ;;  %708 = vmatpush.msrb.mxu2 %v1252_v3 }
 0x266   :  { %675 = vmatpush.msrb.mxu1 %v894_v63 }
 0x267   :  { %747 = vmatpush.msrb.mxu3 %v1229_v0 }
 0x269   :  { %748 = vmatpush.msrb.mxu3 %v1238_v1 }
 0x26b   :  { %749 = vmatpush.msrb.mxu3 %v1245_v2 }
 0x26d   :  { %750 = vmatpush.msrb.mxu3 %v1252_v3 }
 0x27d   :  { %v482_v62 = vpop.f32.mrf.mxu0  ;;  %v527_v15 = vpop.f32.mrf.mxu1 }
 0x27e   :  { %572 = vmatmul.f32.vlgmr.msra.gmra.mxu2 %v527_v15  ;;  %601 = vmatmul.f32.vlgmr.msra.gmra.mxu3 %v482_v62 }
 0x285   :  { %v485_v0 = vpop.f32.mrf.mxu0  ;;  %v530_v1 = vpop.f32.mrf.mxu1 }
 0x286   :  { %575 = vmatmul.f32.gmra.mxu2 %v530_v1  ;;  %604 = vmatmul.f32.gmra.mxu3 %v485_v0 }
 0x28d   :  { %v488_v16 = vpop.f32.mrf.mxu0  ;;  %v533_v17 = vpop.f32.mrf.mxu1 }
 0x28e   :  { %578 = vmatmul.f32.gmra.mxu2 %v533_v17  ;;  %607 = vmatmul.f32.gmra.mxu3 %v488_v16 }
 0x295   :  { %v491_v19 = vpop.f32.mrf.mxu0  ;;  %v536_v21 = vpop.f32.mrf.mxu1 }
 0x296   :  { %581 = vmatmul.f32.gmra.mxu2 %v536_v21  ;;  %610 = vmatmul.f32.gmra.mxu3 %v491_v19 }
 0x29d   :  { %v631_v2 = vpop.f32.mrf.mxu0 }
 0x29e   :  { %676 = vmatmul.f32.vlgmr.msrb.gmra.mxu1 %v631_v2 }
 0x2a5   :  { %v634_v22 = vpop.f32.mrf.mxu0 }
 0x2a6   :  { %679 = vmatmul.f32.gmra.mxu1 %v634_v22  ;;  %v463_v22 = vld [vmem:[%s1523_s6] sm:$0x1] }
 0x2ad   :  { %v637_v24 = vpop.f32.mrf.mxu0 }
 0x2ae   :  { %682 = vmatmul.f32.gmra.mxu1 %v637_v24 }
 0x2b5   :  { %v640_v25 = vpop.f32.mrf.mxu0 }
 0x2b6   :  { %685 = vmatmul.f32.gmra.mxu1 %v640_v25 }
 0x301   :  { %v573_v3 = vpop.f32.mrf.mxu2  ;;  %v602_v26 = vpop.f32.mrf.mxu3 }
 0x302   :  { %v603_v30 = vadd.f32 %v602_v26, %v573_v3  ;;  %v464_v26 = vld [vmem:[%s1524_s7] sm:$0x1] }
 0x309   :  { %v576_v38 = vpop.f32.mrf.mxu2  ;;  %v605_v5 = vpop.f32.mrf.mxu3 }
 0x30a   :  { %v606_v8 = vadd.f32 %v605_v5, %v576_v38 }
 0x311   :  { %v579_v11 = vpop.f32.mrf.mxu2  ;;  %v608_v20 = vpop.f32.mrf.mxu3 }
 0x312   :  { %v609_v28 = vadd.f32 %v608_v20, %v579_v11 }
 0x319   :  { %v582_v32 = vpop.f32.mrf.mxu2  ;;  %v611_v31 = vpop.f32.mrf.mxu3 }
 0x31a   :  { %v612_v33 = vadd.f32 %v611_v31, %v582_v32 }
 0x31b   :  { %v677_v4 = vpop.f32.mrf.mxu1 }
 0x31c   :  { %v1480_v6 = vadd.f32 %v677_v4, %v603_v30 }
 0x31e   :  { %v731_v7 = vmul.f32 %v1480_v6, %v1480_v6  ;;  %709 = vmatmul.f32.vlgmr.msrb.gmra.mxu2 %v1480_v6 }
 0x320   :  { %751 = vmatmul.f32.vlgmr.msrb.gmra.mxu3 %v731_v7 }
 0x323   :  { %v680_v9 = vpop.f32.mrf.mxu1 }
 0x324   :  { %v1485_v10 = vadd.f32 %v680_v9, %v606_v8 }
 0x326   :  { %712 = vmatmul.f32.gmra.mxu2 %v1485_v10  ;;  %v732_v27 = vmul.f32 %v1485_v10, %v1485_v10 }
 0x328   :  { %754 = vmatmul.f32.gmra.mxu3 %v732_v27 }
 0x32b   :  { %v683_v29 = vpop.f32.mrf.mxu1 }
 0x32c   :  { %v1490_v18 = vadd.f32 %v683_v29, %v609_v28 }
 0x32e   :  { %715 = vmatmul.f32.gmra.mxu2 %v1490_v18  ;;  %v733_v23 = vmul.f32 %v1490_v18, %v1490_v18 }
 0x330   :  { %757 = vmatmul.f32.gmra.mxu3 %v733_v23 }
 0x333   :  { %v686_v34 = vpop.f32.mrf.mxu1 }
 0x334   :  { %v692_v35 = vadd.f32 %v686_v34, %v612_v33 }
 0x336   :  { %718 = vmatmul.f32.gmra.mxu2 %v692_v35  ;;  %v734_v36 = vmul.f32 %v692_v35, %v692_v35 }
 0x338   :  { %760 = vmatmul.f32.gmra.mxu3 %v734_v36 }
 0x3a1   :  { %v710_v37 = vpop.f32.mrf.mxu2 }
 0x3a3   :  { %v752_v39 = vpop.f32.mrf.mxu3 }
 0x3a9   :  { %v713_v40 = vpop.f32.mrf.mxu2 }
 0x3aa   :  { %v722_v44 = vadd.f32 %v713_v40, %v710_v37 }
 0x3ab   :  { %v755_v41 = vpop.f32.mrf.mxu3 }
 0x3ac   :  { %v764_v45 = vadd.f32 %v755_v41, %v752_v39 }
 0x3b1   :  { %v716_v42 = vpop.f32.mrf.mxu2 }
 0x3b2   :  { %v723_v46 = vadd.f32 %v722_v44, %v716_v42 }
 0x3b3   :  { %v758_v43 = vpop.f32.mrf.mxu3 }
 0x3b4   :  { %v765_v49 = vadd.f32 %v764_v45, %v758_v43 }
 0x3b9   :  { %v719_v47 = vpop.f32.mrf.mxu2 }
 0x3ba   :  { %v724_v50 = vadd.f32 %v723_v46, %v719_v47 }
 0x3bb   :  { %v761_v51 = vpop.f32.mrf.mxu3 }
 0x3bc   :  { %v725_v52 = vrot.slane %v724_v50, 4  ;;  %v766_v12 = vadd.f32 %v765_v49, %v761_v51 }
 0x3be   :  { %v726_v13 = vadd.f32 %v725_v52, %v724_v50  ;;  %v767_v14 = vrot.slane %v766_v12, 4 }
 0x3c0   :  { %v727_v48 = vrot.slane %v726_v13, 2  ;;  %v768_v53 = vadd.f32 %v767_v14, %v766_v12 }
 0x3c2   :  { %v728_v54 = vadd.f32 %v727_v48, %v726_v13  ;;  %v769_v55 = vrot.slane %v768_v53, 2 }
 0x3c4   :  { %v729_v56 = vrot.slane %v728_v54, 1  ;;  %v770_v57 = vadd.f32 %v769_v55, %v768_v53 }
 0x3c6   :  { %v730_v58 = vadd.f32 %v729_v56, %v728_v54  ;;  %v771_v59 = vrot.slane %v770_v57, 1 }
 0x3c8   :  { %v773_v60 = vmul.f32 0.001953125, %v730_v58  ;;  %v772_v61 = vadd.f32 %v771_v59, %v770_v57 }
 0x3ca   :  { %v775_v62 = vmul.f32 %v773_v60, %v773_v60  ;;  %v774_v15 = vmul.f32 0.001953125, %v772_v61 }
 0x3cc   :  { %v776_v63 = vsub.f32 %v774_v15, %v775_v62 }
 0x3ce   :  { %v777_v0 = vmax.f32 %v776_v63, 0.0 }
 0x3d0   :  { %v778_v1 = vadd.f32 1e-05, %v777_v0 }
 0x3d2   :  { %912 = vrsqrt.f32 %v778_v1  ;;  %vm785_vm6 = vweird.f32 %v778_v1 }
 0x3d8   :  { %v913_v16 = vpop.eup %912 }
 0x3d9   :  { %v780_v17 = vmul.f32 %v913_v16, %v778_v1  ;;  %vm786_vm5 = vweird.f32 %v913_v16 }
 0x3da   :  { %vm787_vm7 = vmor %vm785_vm6, %vm786_vm5 }
 0x3db   :  { %v781_v19 = vmul.f32 %v913_v16, %v780_v17 }
 0x3dd   :  { %v782_v21 = vmul.f32 0.5, %v781_v19 }
 0x3df   :  { %v783_v2 = vsub.f32 1.5, %v782_v21 }
 0x3e1   :  { %v784_v24 = vmul.f32 %v913_v16, %v783_v2 }
 0x3e3   :  { %v788_v25 = vsel %vm787_vm7, %v913_v16, %v784_v24 }
 0x3e4   :  { %v789_v3 = vmul.f32 %v788_v25, %v463_v22 }
 0x3e6   :  { %v790_v30 = vmul.f32 %v789_v3, %v773_v60  ;;  %v793_v38 = vperm.slane %v789_v3, 0 }
 0x3e8   :  { %v791_v4 = vsub.f32 %v464_v26, %v790_v30  ;;  %v795_v5 = vmul.f32 %v793_v38, %v1480_v6  ;;  %v796_v7 = vmul.f32 %v793_v38, %v1485_v10  ;;  %v797_v8 = vmul.f32 %v793_v38, %v1490_v18 }
 0x3e9   :  { %v798_v9 = vmul.f32 %v793_v38, %v692_v35 }
 0x3ea   :  { %v800_v11 = vperm.slane %v791_v4, 0 }
 0x3ec   :  { %v802_v20 = vadd.f32 %v800_v11, %v795_v5  ;;  %v803_v27 = vadd.f32 %v800_v11, %v796_v7  ;;  %v804_v28 = vadd.f32 %v800_v11, %v797_v8  ;;  %v805_v29 = vadd.f32 %v800_v11, %v798_v9 }
 0x3ee   :  { %v806_v23 = vmax.f32 %v802_v20, 0.0  ;;  %v807_v32 = vmax.f32 %v803_v27, 0.0  ;;  %v808_v31 = vmax.f32 %v804_v28, 0.0  ;;  %v809_v33 = vmax.f32 %v805_v29, 0.0 }
 0x3f0   :  { %810 = vst [vmem:[%s1525_s9] sm:$0xff] %v806_v23 }
 0x3f1   :  { %811 = vst [vmem:[%s1525_s9 + $0x8] sm:$0xff] %v807_v32 }
 0x3f2   :  { %812 = vst [vmem:[%s1525_s9 + $0x10] sm:$0xff] %v808_v31 }
 0x3f3   :  { %813 = vst [vmem:[%s1525_s9 + $0x18] sm:$0xff] %v809_v33 }

</bundles_post_ra>
